<compile_context>
chip_gen: v7x
topology: tpu7x:2x2x1
jax: 0.10.0
libtpu: 0.0.40
codegen_flags: <defaults>
</compile_context>

<pallas_src>
import functools

import jax
import jax.numpy as jnp
from jax.experimental import pallas as pl
from jax.experimental.pallas import tpu as pltpu


def _round_up(x: int, m: int) -> int:
    return (x + m - 1) // m * m


def _temporal_sum_kernel(x_ref, o_ref, acc_ref):
    # x_ref: (TB, TT, D) chunk; acc_ref: (TB, D) f32; o_ref: (TB, D) out dtype.
    t = pl.program_id(1)

    @pl.when(t == 0)
    def _():
        acc_ref[...] = jnp.zeros_like(acc_ref)

    # Accumulate in float32 regardless of input dtype.
    acc_ref[...] += jnp.sum(x_ref[...].astype(jnp.float32), axis=1)

    @pl.when(t == pl.num_programs(1) - 1)
    def _():
        o_ref[...] = acc_ref[...].astype(o_ref.dtype)


def _pick_batch_block(b_pad: int, max_tb: int = 64) -> int:
    """Largest multiple of 8 that divides b_pad and is <= max_tb (>= 8)."""
    tb = 8
    for cand in range(8, min(b_pad, max_tb) + 1, 8):
        if b_pad % cand == 0:
            tb = cand
    return tb


@functools.partial(jax.jit, static_argnames=("block_bytes", "min_pallas_bytes"))
def _temporal_sum_pallas(seq, *, block_bytes: int, min_pallas_bytes: int):
    B, T, D = seq.shape
    itemsize = jnp.dtype(seq.dtype).itemsize

    # Tiny problems: kernel launch overhead dwarfs the data movement.
    if B * T * D * itemsize < min_pallas_bytes:
        return jnp.sum(seq.astype(jnp.float32), axis=1).astype(seq.dtype)

    # ---- Tile selection -----------------------------------------------------
    B_pad = _round_up(B, 8)
    TB = _pick_batch_block(B_pad)

    # Target ~block_bytes per input block: TB * TT * D * itemsize.
    row_bytes = max(TB * D * itemsize, 1)
    TT = max(8, min(_round_up(T, 8), (block_bytes // row_bytes) // 8 * 8))
    T_pad = _round_up(T, TT)

    # ---- Zero-pad (exact for a sum) ----------------------------------------
    if (B_pad, T_pad) != (B, T):
        seq = jnp.pad(seq, ((0, B_pad - B), (0, T_pad - T), (0, 0)))

    grid = (B_pad // TB, T_pad // TT)

    out = pl.pallas_call(
        _temporal_sum_kernel,
        out_shape=jax.ShapeDtypeStruct((B_pad, D), seq.dtype),
        grid=grid,
        in_specs=[pl.BlockSpec((TB, TT, D), lambda b, t: (b, t, 0))],
        out_specs=pl.BlockSpec((TB, D), lambda b, t: (b, 0)),
        scratch_shapes=[pltpu.VMEM((TB, D), jnp.float32)],
        compiler_params=pltpu.CompilerParams(
            dimension_semantics=("parallel", "arbitrary"),
        ),
    )(seq)

    return out[:B]


def temporal_avg_pooling(x, *, block_bytes=2 * 1024 * 1024,
                         min_pallas_bytes=256 * 1024):
    """JAX/Pallas equivalent of TemoralAvgPooling.forward.

    Accepts a tuple/list (like the PyTorch module, e.g. an RNN output pair)
    or a bare array; uses element 0 and sums over dim=1.
    """
    seq = x[0] if isinstance(x, (tuple, list)) else x
    return _temporal_sum_pallas(
        seq, block_bytes=block_bytes, min_pallas_bytes=min_pallas_bytes
    )


if __name__ == "__main__":
    key = jax.random.PRNGKey(0)

    # ---- Case 1: module-sized demo (mimic an RNN (output, hidden) tuple) ----
    B, T, D = 2, 8, 32  # batch, seq (time), hidden
    k0, k1, k2 = jax.random.split(key, 3)
    seq_out = jax.random.normal(k0, (B, T, D), dtype=jnp.float32)
    hidden = jax.random.normal(k1, (1, B, D), dtype=jnp.float32)
    x = (seq_out, hidden)

    # min_pallas_bytes=0 forces the Pallas path even at this tiny shape.
    out = temporal_avg_pooling(x, min_pallas_bytes=0)
    out = jax.block_until_ready(out)
    ref = jnp.sum(seq_out, axis=1)
    assert out.shape == (B, D)
    assert jnp.allclose(out, ref, atol=1e-5, rtol=1e-5)

    # ---- Case 2: larger, non-multiple shapes exercise padding + T-chunking --
    B2, T2, D2 = 6, 100, 128
    seq2 = jax.random.normal(k2, (B2, T2, D2), dtype=jnp.float32)
    out2 = temporal_avg_pooling((seq2,), block_bytes=64 * 1024,
                                min_pallas_bytes=0)
    out2 = jax.block_until_ready(out2)
    ref2 = jnp.sum(seq2, axis=1)
    assert out2.shape == (B2, D2)
    assert jnp.allclose(out2, ref2, atol=1e-4, rtol=1e-5)

    print("KERNEL_OK")
</pallas_src>

<mosaic_0001>
module attributes {stable_mosaic.version = 11 : i64} {
  func.func @_temporal_sum_kernel(%arg0: i32, %arg1: i32, %arg2: memref<8x8x32xf32, #tpu.memory_space<vmem>>, %arg3: memref<8x32xf32, #tpu.memory_space<vmem>>, %arg4: memref<8x32xf32, #tpu.memory_space<vmem>>) attributes {dimension_semantics = [#tpu.dimension_semantics<parallel>, #tpu.dimension_semantics<arbitrary>], iteration_bounds = array<i64: 1, 1>, scalar_prefetch = 0 : i64, scratch_operands = 1 : i64, tpu.core_type = #tpu.core_type<tc>, window_params = [{transform_indices = @transform_0, window_bounds = array<i64: 8, 8, 32>}, {transform_indices = @transform_1, window_bounds = array<i64: 8, 32>}]} {
    %c0_i32 = arith.constant 0 : i32
    %0 = arith.cmpi eq, %arg1, %c0_i32 : i32
    %1 = arith.extui %0 : i1 to i32
    %c0_i32_0 = arith.constant 0 : i32
    %2 = arith.cmpi ne, %1, %c0_i32_0 : i32
    scf.if %2 {
      %cst_9 = arith.constant 0.000000e+00 : f32
      %11 = vector.broadcast %cst_9 : f32 to vector<8x32xf32>
      %c0_10 = arith.constant 0 : index
      %c0_11 = arith.constant 0 : index
      %12 = vector.load %arg4[%c0_10, %c0_11] : memref<8x32xf32, #tpu.memory_space<vmem>>, vector<8x32xf32>
      tpu.vector_store %arg4[%c0_10, %c0_11], %11 {strides = array<i32>} : memref<8x32xf32, #tpu.memory_space<vmem>>, vector<8x32xf32>,
    } else {
    }
    %c0 = arith.constant 0 : index
    %c0_1 = arith.constant 0 : index
    %3 = vector.load %arg4[%c0, %c0_1] : memref<8x32xf32, #tpu.memory_space<vmem>>, vector<8x32xf32>
    %c0_2 = arith.constant 0 : index
    %c0_3 = arith.constant 0 : index
    %c0_4 = arith.constant 0 : index
    %4 = vector.load %arg2[%c0_2, %c0_3, %c0_4] : memref<8x8x32xf32, #tpu.memory_space<vmem>>, vector<8x8x32xf32>
    %cst = arith.constant dense<0.000000e+00> : vector<8x32xf32>
    %5 = vector.multi_reduction <add>, %4, %cst [1] : vector<8x8x32xf32> to vector<8x32xf32>
    %6 = arith.addf %3, %5 : vector<8x32xf32>
    %c0_5 = arith.constant 0 : index
    %c0_6 = arith.constant 0 : index
    %7 = vector.load %arg4[%c0_5, %c0_6] : memref<8x32xf32, #tpu.memory_space<vmem>>, vector<8x32xf32>
    tpu.vector_store %arg4[%c0_5, %c0_6], %6 {strides = array<i32>} : memref<8x32xf32, #tpu.memory_space<vmem>>, vector<8x32xf32>,
    %c0_i32_7 = arith.constant 0 : i32
    %8 = arith.cmpi eq, %arg1, %c0_i32_7 : i32
    %9 = arith.extui %8 : i1 to i32
    %c0_i32_8 = arith.constant 0 : i32
    %10 = arith.cmpi ne, %9, %c0_i32_8 : i32
    scf.if %10 {
      %c0_9 = arith.constant 0 : index
      %c0_10 = arith.constant 0 : index
      %11 = vector.load %arg4[%c0_9, %c0_10] : memref<8x32xf32, #tpu.memory_space<vmem>>, vector<8x32xf32>
      %c0_11 = arith.constant 0 : index
      %c0_12 = arith.constant 0 : index
      %12 = vector.load %arg3[%c0_11, %c0_12] : memref<8x32xf32, #tpu.memory_space<vmem>>, vector<8x32xf32>
      tpu.vector_store %arg3[%c0_11, %c0_12], %11 {strides = array<i32>} : memref<8x32xf32, #tpu.memory_space<vmem>>, vector<8x32xf32>,
    } else {
    }
    return
  }
  func.func @transform_0(%arg0: i32, %arg1: i32) -> (i32, i32, i32) {
    %c0_i32 = arith.constant 0 : i32
    %c0_i32_0 = arith.constant 0 : i32
    return %arg0, %arg1, %c0_i32 : i32, i32, i32
  }
  func.func @transform_1(%arg0: i32, %arg1: i32) -> (i32, i32) {
    %c0_i32 = arith.constant 0 : i32
    %c0_i32_0 = arith.constant 0 : i32
    return %arg0, %c0_i32 : i32, i32
  }
}

</mosaic_0001>

<bundles_post_ra>
// kernel: _temporal_sum_pallas.1
= control target key start
LH: loop header
LB: loop body
LE: loop exit
PB: predicated region body
PF: predicated region fallthrough
CT: control target
= control target key end

     0   :  { %vm12_vm0 = vcmask 261120   ;;  %v115_v0 = vmov 0.0   ;;  %vm88_vm1 = vcmask 1041409   ;;  %vm90_vm2 = vcmask 1042434   ;;  %s167_s0 = inlined_call_operand.vmem [shape: f32[8,8,32], index: 0, kind: input, shape index: {}]   ;;  %s168_s1 = inlined_call_operand.vmem [shape: f32[8,32], index: 1, kind: output, shape index: {}]  }
   0x1   :  { %13 = vst.msk [vmem:[#allocation2] sm:$0xff] %vm12_vm0, %v115_v0  ;;  %v15_v1 = vld [vmem:[%s167_s0] sm:$0xff]  ;;  %v16_v2 = vld [vmem:[%s167_s0 + $0x8] sm:$0xff]  ;;  %v17_v3 = vld [vmem:[%s167_s0 + $0x10] sm:$0xff]  ;;  %vm92_vm3 = vcmask 1043459   ;;  %vm94_vm4 = vcmask 1044484  }
   0x2   :  { %v18_v4 = vld [vmem:[%s167_s0 + $0x18] sm:$0xff]  ;;  %v19_v5 = vld [vmem:[%s167_s0 + $0x20] sm:$0xff]  ;;  %v20_v6 = vld [vmem:[%s167_s0 + $0x28] sm:$0xff]  ;;  %v24_v7 = vsel %vm12_vm0, %v15_v1, 0.0  ;;  %v31_v8 = vsel %vm12_vm0, %v16_v2, 0.0  ;;  %v38_v9 = vsel %vm12_vm0, %v17_v3, 0.0 }
   0x3   :  { %v21_v10 = vld [vmem:[%s167_s0 + $0x30] sm:$0xff]  ;;  %v22_v11 = vld [vmem:[%s167_s0 + $0x38] sm:$0xff]  ;;  %v25_v12 = vrot.slane %v24_v7, 4  ;;  %v32_v13 = vrot.slane %v31_v8, 4  ;;  %v39_v14 = vrot.slane %v38_v9, 4  ;;  %v45_v15 = vsel %vm12_vm0, %v18_v4, 0.0 }
   0x4   :  { %v46_v16 = vrot.slane %v45_v15, 4  ;;  %v52_v17 = vsel %vm12_vm0, %v19_v5, 0.0  ;;  %v59_v18 = vsel %vm12_vm0, %v20_v6, 0.0  ;;  %v66_v19 = vsel %vm12_vm0, %v21_v10, 0.0 }
   0x5   :  { %v26_v20 = vadd.f32 %v25_v12, %v24_v7  ;;  %v33_v21 = vadd.f32 %v32_v13, %v31_v8  ;;  %v40_v22 = vadd.f32 %v39_v14, %v38_v9  ;;  %v53_v23 = vrot.slane %v52_v17, 4 }
   0x6   :  { %v47_v24 = vadd.f32 %v46_v16, %v45_v15  ;;  %v60_v25 = vrot.slane %v59_v18, 4  ;;  %v67_v26 = vrot.slane %v66_v19, 4  ;;  %v73_v27 = vsel %vm12_vm0, %v22_v11, 0.0 }
   0x7   :  { %v27_v28 = vrot.slane %v26_v20, 2  ;;  %v34_v29 = vrot.slane %v33_v21, 2  ;;  %v41_v30 = vrot.slane %v40_v22, 2  ;;  %v54_v31 = vadd.f32 %v53_v23, %v52_v17 }
   0x8   :  { %v48_v32 = vrot.slane %v47_v24, 2  ;;  %v61_v33 = vadd.f32 %v60_v25, %v59_v18  ;;  %v68_v34 = vadd.f32 %v67_v26, %v66_v19  ;;  %v74_v35 = vrot.slane %v73_v27, 4  ;;  %v14_v5 = vld [vmem:[#allocation2] sm:$0xff] }
   0x9   :  { %v28_v36 = vadd.f32 %v27_v28, %v26_v20  ;;  %v35_v37 = vadd.f32 %v34_v29, %v33_v21  ;;  %v42_v38 = vadd.f32 %v41_v30, %v40_v22  ;;  %v55_v39 = vrot.slane %v54_v31, 2 }
   0xa   :  { %v49_v40 = vadd.f32 %v48_v32, %v47_v24  ;;  %v62_v41 = vrot.slane %v61_v33, 2  ;;  %v69_v42 = vrot.slane %v68_v34, 2  ;;  %v75_v43 = vadd.f32 %v74_v35, %v73_v27 }
   0xb   :  { %v29_v44 = vrot.slane %v28_v36, 1  ;;  %v36_v45 = vrot.slane %v35_v37, 1  ;;  %v43_v46 = vrot.slane %v42_v38, 1  ;;  %v56_v47 = vadd.f32 %v55_v39, %v54_v31 }
   0xc   :  { %v50_v48 = vrot.slane %v49_v40, 1  ;;  %v63_v49 = vadd.f32 %v62_v41, %v61_v33  ;;  %v70_v50 = vadd.f32 %v69_v42, %v68_v34  ;;  %v76_v51 = vrot.slane %v75_v43, 2 }
   0xd   :  { %v30_v52 = vadd.f32 %v29_v44, %v28_v36  ;;  %v37_v53 = vadd.f32 %v36_v45, %v35_v37  ;;  %v44_v54 = vadd.f32 %v43_v46, %v42_v38  ;;  %v57_v55 = vrot.slane %v56_v47, 1 }
   0xe   :  { %v51_v56 = vadd.f32 %v50_v48, %v49_v40  ;;  %v64_v57 = vrot.slane %v63_v49, 1  ;;  %v71_v58 = vrot.slane %v70_v50, 1  ;;  %v77_v59 = vadd.f32 %v76_v51, %v75_v43 }
   0xf   :  { %v58_v60 = vadd.f32 %v57_v55, %v56_v47  ;;  %v89_v61 = vsel %vm88_vm1, %v37_v53, %v30_v52  ;;  %vm96_vm5 = vcmask 1045509   ;;  %vm98_vm6 = vcmask 1046534  }
  0x10   :  { %v65_v62 = vadd.f32 %v64_v57, %v63_v49  ;;  %v72_v63 = vadd.f32 %v71_v58, %v70_v50  ;;  %v78_v0 = vrot.slane %v77_v59, 1  ;;  %v91_v1 = vsel %vm90_vm2, %v44_v54, %v89_v61 }
  0x11   :  { %v93_v2 = vsel %vm92_vm3, %v51_v56, %v91_v1  ;;  %vm100_vm7 = vcmask 1047559  }
  0x12   :  { %v79_v3 = vadd.f32 %v78_v0, %v77_v59  ;;  %v95_v4 = vsel %vm94_vm4, %v58_v60, %v93_v2 }
  0x13   :  { %v97_v6 = vsel %vm96_vm5, %v65_v62, %v95_v4 }
  0x14   :  { %v99_v7 = vsel %vm98_vm6, %v72_v63, %v97_v6 }
  0x15   :  { %v101_v8 = vsel %vm100_vm7, %v79_v3, %v99_v7 }
  0x16   :  { %v103_v9 = vadd.f32 %v101_v8, %v14_v5 }
  0x18   :  { %104 = vst.msk [vmem:[#allocation2] sm:$0xff] %vm12_vm0, %v103_v9 }
  0x1f   :  { %v108_v10 = vld [vmem:[#allocation2] sm:$0xff] }
  0x20   :  { %109 = vst.msk [vmem:[%s168_s1] sm:$0xff] %vm12_vm0, %v108_v10 }

</bundles_post_ra>
